<compile_context>
chip_gen: v6e
topology: v6e:2x2x1
jax: 0.10.0
libtpu: 0.0.40
codegen_flags: <defaults>
</compile_context>

<pallas_src>
import functools

import jax
import jax.numpy as jnp
from jax.experimental import pallas as pl
from jax.experimental.pallas import tpu as pltpu

N_NODES = 16   # number of graph nodes
DIM_IN  = 32   # input node-feature dim
DIM_H   = 32   # hidden dim of hs / hf embeddings
N_PAIRS = 8    # number of (tt_pair_index) pairs

_VMEM_SPEC = pl.BlockSpec(memory_space=pltpu.MemorySpace.VMEM)


# ---------------------------------------------------------------------------
# Single fused kernel: model forward + in-kernel pair gather + all three losses
# ---------------------------------------------------------------------------
def _fused_kernel(x_ref, w_ref, aux_ref, h_ref, losses_ref, *, n_pairs):
    n, dim_in = x_ref.shape
    d = h_ref.shape[1] // 2          # hidden dim of hs / hf
    p = n_pairs
    inv_n = 1.0 / n
    inv_p = 1.0 / p
    inv_pm1 = 1.0 / (p - 1)

    # ---- synthetic MLP-GNN model (real self.model is an external module) ----
    # h = relu(x @ [ws | wf]);  hs = h[:, :d], hf = h[:, d:]
    x = x_ref[...]                                                      # (N, DIM_IN)
    w_hid = w_ref[0:dim_in, :]                                          # (DIM_IN, 2D)
    h = jnp.maximum(
        jnp.dot(x, w_hid, preferred_element_type=jnp.float32), 0.0)     # (N, 2D)
    h_ref[...] = h                   # ONE lane-dense writeback; hs/hf split on host
    hf = h[:, d:]                                                       # (N, D)

    # ---- prob / is_rc heads on the VPU (keeps the MXU free for the gather) ----
    head_w = w_ref[dim_in:dim_in + 1, :]                                # (1, 2D) [wrc|wp]
    hw = h * head_w                                                     # (N, 2D)
    is_rc = jnp.sum(hw[:, :d], axis=1, keepdims=True)                   # (N, 1) logits
    prob = jax.nn.sigmoid(jnp.sum(hw[:, d:], axis=1, keepdims=True))    # (N, 1)

    aux = aux_ref[...]                                                  # (rows, 4)
    y_rc = aux[0:n, 0:1]                                                # is_rc labels
    y_prob = aux[0:n, 1:2]                                              # prob labels

    # ---- LProb: nn.L1Loss (mean) on the sigmoid prob head ----
    lprob = jnp.sum(jnp.abs(prob - y_prob), axis=0, keepdims=True) * inv_n      # (1,1)

    # ---- LRC: BCE-with-logits (mean, numerically stable) ----
    # log(1+exp(-|z|)) is stable here (argument in [1,2]); log1p avoided for
    # lowering safety — difference vs torch is < 1e-8 absolute per element.
    bce = (jnp.maximum(is_rc, 0.0) - is_rc * y_rc
           + jnp.log(1.0 + jnp.exp(-jnp.abs(is_rc))))
    lrc = jnp.sum(bce, axis=0, keepdims=True) * inv_n                           # (1,1)

    # ---- in-kernel pair gather: ONE one-hot matmul for both pair endpoints ----
    # aux col 3 holds [idx_a..., idx_b...] as exact small-integer floats.
    idx_ab = aux[0:2 * p, 3:4].astype(jnp.int32)                        # (2P, 1)
    iota_n = jax.lax.broadcasted_iota(jnp.int32, (2 * p, n), 1)         # (2P, N)
    oh = (iota_n == idx_ab).astype(jnp.float32)                         # (2P, N)
    gathered = jnp.dot(oh, hf, preferred_element_type=jnp.float32)      # (2P, D)
    node_a = gathered[0:p, :]
    node_b = gathered[p:2 * p, :]

    # ---- LFunc: cosine distance + zero-normalization + L1 ----
    dot_ab = jnp.sum(node_a * node_b, axis=1, keepdims=True)            # (P, 1)
    # torch.cosine_similarity clamps each norm separately with eps=1e-8
    na = jnp.maximum(jnp.sqrt(jnp.sum(node_a * node_a, axis=1, keepdims=True)), 1e-8)
    nb = jnp.maximum(jnp.sqrt(jnp.sum(node_b * node_b, axis=1, keepdims=True)), 1e-8)
    cos = dot_ab / (na * nb)          # exact divide for parity with torch
    emb_dis = 1.0 - cos                                                 # (P, 1)
    tt_dis = aux[0:p, 2:3]                                              # (P, 1)

    def znorm(v):
        # (v - mean) / std, unbiased std (ddof=1); no eps, matching the PyTorch ref.
        mean = jnp.sum(v, axis=0, keepdims=True) * inv_p                # (1, 1)
        c = v - mean
        var = jnp.sum(c * c, axis=0, keepdims=True) * inv_pm1           # (1, 1)
        return c * jax.lax.rsqrt(var)                                   # EUP rsqrt

    lfunc = jnp.sum(jnp.abs(znorm(emb_dis) - znorm(tt_dis)),
                    axis=0, keepdims=True) * inv_p                      # (1, 1)

    # ---- pack the three scalars into a tiny (1, 3) output row ----
    lane = jax.lax.broadcasted_iota(jnp.int32, (1, 3), 1)
    losses_ref[...] = jnp.where(lane == 0, lprob, jnp.where(lane == 1, lrc, lfunc))


# ---------------------------------------------------------------------------
# One-time parameter packing (keep OUT of the per-step path)
# ---------------------------------------------------------------------------
def pack_params(ws, wf, wp, wrc):
    """Merge hidden weights and head weights into one (DIM_IN+1, 2*DIM_H) tile."""
    w_hid = jnp.concatenate([ws, wf], axis=1)                           # (DIM_IN, 2D)
    head = jnp.concatenate([wrc[:, 0], wp[:, 0]])[None, :]              # (1, 2D) [wrc|wp]
    return jnp.concatenate([w_hid, head], axis=0).astype(jnp.float32)


# ---------------------------------------------------------------------------
# ModelWithLoss.forward equivalent (jitted per-step path)
# ---------------------------------------------------------------------------
@jax.jit
def model_with_loss_forward(x, w_packed, prob_label, isrc_label, tt_pair_index, tt_dis):
    n = x.shape[0]
    dim_h = w_packed.shape[1] // 2
    p = tt_pair_index.shape[1]

    # Pack all per-batch side inputs into ONE lane-packed tile (single input DMA):
    #   col 0 = is_rc labels, col 1 = prob labels, col 2 = tt_dis (padded),
    #   col 3 = [idx_a..., idx_b...] as floats (exact for small ints, padded).
    rows = max(n, 2 * p)

    def pad_rows(v):
        v = v.astype(jnp.float32)
        return jnp.pad(v, ((0, rows - v.shape[0]), (0, 0)))

    idx_col = tt_pair_index.reshape(-1).astype(jnp.float32)[:, None]    # (2P, 1)
    aux = jnp.concatenate(
        [pad_rows(isrc_label), pad_rows(prob_label), pad_rows(tt_dis), pad_rows(idx_col)],
        axis=1)                                                         # (rows, 4)

    # TODO(synk): when calling this per-graph over a batch on v7x, add a leading
    # batch grid axis with dimension_semantics=("parallel",) to use both TCs.
    h, losses = pl.pallas_call(
        functools.partial(_fused_kernel, n_pairs=p),
        out_shape=(
            jax.ShapeDtypeStruct((n, 2 * dim_h), jnp.float32),          # h = [hs | hf]
            jax.ShapeDtypeStruct((1, 3), jnp.float32),                  # packed losses
        ),
        in_specs=[_VMEM_SPEC, _VMEM_SPEC, _VMEM_SPEC],
        out_specs=(_VMEM_SPEC, _VMEM_SPEC),
    )(x.astype(jnp.float32), w_packed, aux)

    hs = h[:, :dim_h]                 # host-side slicing is free metadata inside jit
    hf = h[:, dim_h:]
    loss_stats = {'LProb': losses[0, 0], 'LRC': losses[0, 1], 'LFunc': losses[0, 2]}
    return hs, hf, loss_stats


if __name__ == "__main__":
    key = jax.random.PRNGKey(0)
    ks = jax.random.split(key, 9)

    # synthetic "batch"
    x            = jax.random.normal(ks[0], (N_NODES, DIM_IN), jnp.float32)
    prob_label   = jax.random.uniform(ks[1], (N_NODES, 1), jnp.float32)
    isrc_label   = (jax.random.uniform(ks[2], (N_NODES, 1)) > 0.5).astype(jnp.float32)
    tt_pair_idx  = jax.random.randint(ks[3], (2, N_PAIRS), 0, N_NODES, jnp.int32)
    tt_dis       = jax.random.uniform(ks[4], (N_PAIRS, 1), jnp.float32)

    # deterministic synthetic model parameters
    # TODO(synk): the real `self.model` is an externally injected GNN; a 1-layer
    # MLP stands in for it here (the loss math is the faithful part).
    ws  = 0.1 * jax.random.normal(ks[5], (DIM_IN, DIM_H), jnp.float32)
    wf  = 0.1 * jax.random.normal(ks[6], (DIM_IN, DIM_H), jnp.float32)
    wp  = 0.1 * jax.random.normal(ks[7], (DIM_H, 1), jnp.float32)
    wrc = 0.1 * jax.random.normal(ks[8], (DIM_H, 1), jnp.float32)

    w_packed = pack_params(ws, wf, wp, wrc)        # one-time, outside the step path

    hs, hf, loss_stats = model_with_loss_forward(
        x, w_packed, prob_label, isrc_label, tt_pair_idx, tt_dis)

    jax.block_until_ready((hs, hf, loss_stats))
    print("KERNEL_OK")
</pallas_src>

<mosaic_0001>
module attributes {stable_mosaic.version = 11 : i64} {
  func.func @_fused_kernel(%arg0: memref<16x32xf32, #tpu.memory_space<vmem>>, %arg1: memref<33x64xf32, #tpu.memory_space<vmem>>, %arg2: memref<16x4xf32, #tpu.memory_space<vmem>>, %arg3: memref<16x64xf32, #tpu.memory_space<vmem>>, %arg4: memref<1x3xf32, #tpu.memory_space<vmem>>) attributes {dimension_semantics = [], scalar_prefetch = 0 : i64, scratch_operands = 0 : i64, tpu.core_type = #tpu.core_type<tc>} {
    %c0 = arith.constant 0 : index
    %c0_0 = arith.constant 0 : index
    %0 = vector.load %arg0[%c0, %c0_0] : memref<16x32xf32, #tpu.memory_space<vmem>>, vector<16x32xf32>
    %c0_1 = arith.constant 0 : index
    %c0_2 = arith.constant 0 : index
    %1 = vector.load %arg1[%c0_1, %c0_2] : memref<33x64xf32, #tpu.memory_space<vmem>>, vector<32x64xf32>
    %cst = arith.constant dense<0.000000e+00> : vector<16x64xf32>
    %2 = tpu.matmul %0, %1, %cst {dimension_numbers = #tpu.dot_dimension_numbers<[1], [0], [0], [1], [0, 0, 1, 1], [], []>} : vector<16x32xf32>, vector<32x64xf32>, vector<16x64xf32> -> vector<16x64xf32>
    %cst_3 = arith.constant 0.000000e+00 : f32
    %3 = vector.broadcast %cst_3 : f32 to vector<16x64xf32>
    %4 = arith.maximumf %2, %3 : vector<16x64xf32>
    %c0_4 = arith.constant 0 : index
    %c0_5 = arith.constant 0 : index
    %5 = vector.load %arg3[%c0_4, %c0_5] : memref<16x64xf32, #tpu.memory_space<vmem>>, vector<16x64xf32>
    tpu.vector_store %arg3[%c0_4, %c0_5], %4 {strides = array<i32>} : memref<16x64xf32, #tpu.memory_space<vmem>>, vector<16x64xf32>,
    %6 = vector.extract_strided_slice %4 {offsets = [0, 32], sizes = [16, 32], strides = [1, 1]} : vector<16x64xf32> to vector<16x32xf32>
    %c32 = arith.constant 32 : index
    %c0_6 = arith.constant 0 : index
    %7 = vector.load %arg1[%c32, %c0_6] : memref<33x64xf32, #tpu.memory_space<vmem>>, vector<1x64xf32>
    %8 = vector.broadcast %7 : vector<1x64xf32> to vector<16x64xf32>
    %9 = arith.mulf %4, %8 : vector<16x64xf32>
    %10 = vector.extract_strided_slice %9 {offsets = [0, 0], sizes = [16, 32], strides = [1, 1]} : vector<16x64xf32> to vector<16x32xf32>
    %cst_7 = arith.constant dense<0.000000e+00> : vector<16xf32>
    %11 = vector.multi_reduction <add>, %10, %cst_7 [1] : vector<16x32xf32> to vector<16xf32>
    %12 = vector.shape_cast %11 : vector<16xf32> to vector<16x1xf32>
    %13 = vector.extract_strided_slice %9 {offsets = [0, 32], sizes = [16, 32], strides = [1, 1]} : vector<16x64xf32> to vector<16x32xf32>
    %cst_8 = arith.constant dense<0.000000e+00> : vector<16xf32>
    %14 = vector.multi_reduction <add>, %13, %cst_8 [1] : vector<16x32xf32> to vector<16xf32>
    %15 = vector.shape_cast %14 : vector<16xf32> to vector<16x1xf32>
    %16 = arith.negf %15 : vector<16x1xf32>
    %17 = math.exp %16 : vector<16x1xf32>
    %cst_9 = arith.constant 1.000000e+00 : f32
    %18 = vector.broadcast %cst_9 : f32 to vector<16x1xf32>
    %19 = arith.addf %18, %17 : vector<16x1xf32>
    %20 = arith.divf %18, %19 : vector<16x1xf32>
    %c0_10 = arith.constant 0 : index
    %c0_11 = arith.constant 0 : index
    %21 = vector.load %arg2[%c0_10, %c0_11] : memref<16x4xf32, #tpu.memory_space<vmem>>, vector<16x4xf32>
    %22 = vector.extract_strided_slice %21 {offsets = [0, 0], sizes = [16, 1], strides = [1, 1]} : vector<16x4xf32> to vector<16x1xf32>
    %23 = vector.extract_strided_slice %21 {offsets = [0, 1], sizes = [16, 1], strides = [1, 1]} : vector<16x4xf32> to vector<16x1xf32>
    %24 = arith.subf %20, %23 : vector<16x1xf32>
    %25 = math.absf %24 : vector<16x1xf32>
    %cst_12 = arith.constant dense<0.000000e+00> : vector<1xf32>
    %26 = vector.multi_reduction <add>, %25, %cst_12 [0] : vector<16x1xf32> to vector<1xf32>
    %27 = vector.shape_cast %26 : vector<1xf32> to vector<1x1xf32>
    %cst_13 = arith.constant 6.250000e-02 : f32
    %28 = vector.broadcast %cst_13 : f32 to vector<1x1xf32>
    %29 = arith.mulf %27, %28 : vector<1x1xf32>
    %cst_14 = arith.constant 0.000000e+00 : f32
    %30 = vector.broadcast %cst_14 : f32 to vector<16x1xf32>
    %31 = arith.maximumf %12, %30 : vector<16x1xf32>
    %32 = arith.mulf %12, %22 : vector<16x1xf32>
    %33 = arith.subf %31, %32 : vector<16x1xf32>
    %34 = math.absf %12 : vector<16x1xf32>
    %cst_15 = arith.constant 0.000000e+00 : f32
    %35 = vector.broadcast %cst_15 : f32 to vector<16x1xf32>
    %36 = arith.subf %35, %34 : vector<16x1xf32>
    %37 = math.exp %36 : vector<16x1xf32>
    %cst_16 = arith.constant 1.000000e+00 : f32
    %38 = vector.broadcast %cst_16 : f32 to vector<16x1xf32>
    %39 = arith.addf %38, %37 : vector<16x1xf32>
    %40 = math.log %39 : vector<16x1xf32>
    %41 = arith.addf %33, %40 : vector<16x1xf32>
    %cst_17 = arith.constant dense<0.000000e+00> : vector<1xf32>
    %42 = vector.multi_reduction <add>, %41, %cst_17 [0] : vector<16x1xf32> to vector<1xf32>
    %43 = vector.shape_cast %42 : vector<1xf32> to vector<1x1xf32>
    %cst_18 = arith.constant 6.250000e-02 : f32
    %44 = vector.broadcast %cst_18 : f32 to vector<1x1xf32>
    %45 = arith.mulf %43, %44 : vector<1x1xf32>
    %46 = vector.extract_strided_slice %21 {offsets = [0, 3], sizes = [16, 1], strides = [1, 1]} : vector<16x4xf32> to vector<16x1xf32>
    %47 = arith.fptosi %46 : vector<16x1xf32> to vector<16x1xi32>
    %48 = tpu.iota {dimensions = array<i32: 1>} : vector<16x16xi32>
    %49 = vector.broadcast %47 : vector<16x1xi32> to vector<16x16xi32>
    %50 = arith.cmpi eq, %48, %49 : vector<16x16xi32>
    %51 = arith.extui %50 : vector<16x16xi1> to vector<16x16xi32>
    %52 = arith.sitofp %51 : vector<16x16xi32> to vector<16x16xf32>
    %cst_19 = arith.constant dense<0.000000e+00> : vector<16x32xf32>
    %53 = tpu.matmul %52, %6, %cst_19 {dimension_numbers = #tpu.dot_dimension_numbers<[1], [0], [0], [1], [0, 0, 1, 1], [], []>} : vector<16x16xf32>, vector<16x32xf32>, vector<16x32xf32> -> vector<16x32xf32>
    %54 = vector.extract_strided_slice %53 {offsets = [0, 0], sizes = [8, 32], strides = [1, 1]} : vector<16x32xf32> to vector<8x32xf32>
    %55 = vector.extract_strided_slice %53 {offsets = [8, 0], sizes = [8, 32], strides = [1, 1]} : vector<16x32xf32> to vector<8x32xf32>
    %56 = arith.mulf %54, %55 : vector<8x32xf32>
    %cst_20 = arith.constant dense<0.000000e+00> : vector<8xf32>
    %57 = vector.multi_reduction <add>, %56, %cst_20 [1] : vector<8x32xf32> to vector<8xf32>
    %58 = vector.shape_cast %57 : vector<8xf32> to vector<8x1xf32>
    %59 = arith.mulf %54, %54 : vector<8x32xf32>
    %cst_21 = arith.constant dense<0.000000e+00> : vector<8xf32>
    %60 = vector.multi_reduction <add>, %59, %cst_21 [1] : vector<8x32xf32> to vector<8xf32>
    %61 = vector.shape_cast %60 : vector<8xf32> to vector<8x1xf32>
    %62 = math.sqrt %61 : vector<8x1xf32>
    %cst_22 = arith.constant 9.99999993E-9 : f32
    %63 = vector.broadcast %cst_22 : f32 to vector<8x1xf32>
    %64 = arith.maximumf %62, %63 : vector<8x1xf32>
    %65 = arith.mulf %55, %55 : vector<8x32xf32>
    %cst_23 = arith.constant dense<0.000000e+00> : vector<8xf32>
    %66 = vector.multi_reduction <add>, %65, %cst_23 [1] : vector<8x32xf32> to vector<8xf32>
    %67 = vector.shape_cast %66 : vector<8xf32> to vector<8x1xf32>
    %68 = math.sqrt %67 : vector<8x1xf32>
    %cst_24 = arith.constant 9.99999993E-9 : f32
    %69 = vector.broadcast %cst_24 : f32 to vector<8x1xf32>
    %70 = arith.maximumf %68, %69 : vector<8x1xf32>
    %71 = arith.mulf %64, %70 : vector<8x1xf32>
    %72 = arith.divf %58, %71 : vector<8x1xf32>
    %cst_25 = arith.constant 1.000000e+00 : f32
    %73 = vector.broadcast %cst_25 : f32 to vector<8x1xf32>
    %74 = arith.subf %73, %72 : vector<8x1xf32>
    %75 = vector.extract_strided_slice %21 {offsets = [0, 2], sizes = [8, 1], strides = [1, 1]} : vector<16x4xf32> to vector<8x1xf32>
    %cst_26 = arith.constant dense<0.000000e+00> : vector<1xf32>
    %76 = vector.multi_reduction <add>, %74, %cst_26 [0] : vector<8x1xf32> to vector<1xf32>
    %77 = vector.shape_cast %76 : vector<1xf32> to vector<1x1xf32>
    %cst_27 = arith.constant 1.250000e-01 : f32
    %78 = vector.broadcast %cst_27 : f32 to vector<1x1xf32>
    %79 = arith.mulf %77, %78 : vector<1x1xf32>
    %80 = vector.broadcast %79 : vector<1x1xf32> to vector<8x1xf32>
    %81 = arith.subf %74, %80 : vector<8x1xf32>
    %82 = arith.mulf %81, %81 : vector<8x1xf32>
    %cst_28 = arith.constant dense<0.000000e+00> : vector<1xf32>
    %83 = vector.multi_reduction <add>, %82, %cst_28 [0] : vector<8x1xf32> to vector<1xf32>
    %84 = vector.shape_cast %83 : vector<1xf32> to vector<1x1xf32>
    %cst_29 = arith.constant 0.142857149 : f32
    %85 = vector.broadcast %cst_29 : f32 to vector<1x1xf32>
    %86 = arith.mulf %84, %85 : vector<1x1xf32>
    %87 = math.rsqrt %86 : vector<1x1xf32>
    %88 = vector.broadcast %87 : vector<1x1xf32> to vector<8x1xf32>
    %89 = arith.mulf %81, %88 : vector<8x1xf32>
    %cst_30 = arith.constant dense<0.000000e+00> : vector<1xf32>
    %90 = vector.multi_reduction <add>, %75, %cst_30 [0] : vector<8x1xf32> to vector<1xf32>
    %91 = vector.shape_cast %90 : vector<1xf32> to vector<1x1xf32>
    %cst_31 = arith.constant 1.250000e-01 : f32
    %92 = vector.broadcast %cst_31 : f32 to vector<1x1xf32>
    %93 = arith.mulf %91, %92 : vector<1x1xf32>
    %94 = vector.broadcast %93 : vector<1x1xf32> to vector<8x1xf32>
    %95 = arith.subf %75, %94 : vector<8x1xf32>
    %96 = arith.mulf %95, %95 : vector<8x1xf32>
    %cst_32 = arith.constant dense<0.000000e+00> : vector<1xf32>
    %97 = vector.multi_reduction <add>, %96, %cst_32 [0] : vector<8x1xf32> to vector<1xf32>
    %98 = vector.shape_cast %97 : vector<1xf32> to vector<1x1xf32>
    %cst_33 = arith.constant 0.142857149 : f32
    %99 = vector.broadcast %cst_33 : f32 to vector<1x1xf32>
    %100 = arith.mulf %98, %99 : vector<1x1xf32>
    %101 = math.rsqrt %100 : vector<1x1xf32>
    %102 = vector.broadcast %101 : vector<1x1xf32> to vector<8x1xf32>
    %103 = arith.mulf %95, %102 : vector<8x1xf32>
    %104 = arith.subf %89, %103 : vector<8x1xf32>
    %105 = math.absf %104 : vector<8x1xf32>
    %cst_34 = arith.constant dense<0.000000e+00> : vector<1xf32>
    %106 = vector.multi_reduction <add>, %105, %cst_34 [0] : vector<8x1xf32> to vector<1xf32>
    %107 = vector.shape_cast %106 : vector<1xf32> to vector<1x1xf32>
    %cst_35 = arith.constant 1.250000e-01 : f32
    %108 = vector.broadcast %cst_35 : f32 to vector<1x1xf32>
    %109 = arith.mulf %107, %108 : vector<1x1xf32>
    %110 = tpu.iota {dimensions = array<i32: 1>} : vector<1x3xi32>
    %c0_i32 = arith.constant 0 : i32
    %111 = vector.broadcast %c0_i32 : i32 to vector<1x3xi32>
    %112 = arith.cmpi eq, %110, %111 : vector<1x3xi32>
    %c1_i32 = arith.constant 1 : i32
    %113 = vector.broadcast %c1_i32 : i32 to vector<1x3xi32>
    %114 = arith.cmpi eq, %110, %113 : vector<1x3xi32>
    %115 = vector.shape_cast %45 : vector<1x1xf32> to vector<1x1xf32>
    %116 = vector.broadcast %115 : vector<1x1xf32> to vector<1x3xf32>
    %117 = vector.shape_cast %109 : vector<1x1xf32> to vector<1x1xf32>
    %118 = vector.broadcast %117 : vector<1x1xf32> to vector<1x3xf32>
    %119 = arith.select %114, %116, %118 : vector<1x3xi1>, vector<1x3xf32>
    %120 = vector.shape_cast %29 : vector<1x1xf32> to vector<1x1xf32>
    %121 = vector.broadcast %120 : vector<1x1xf32> to vector<1x3xf32>
    %122 = arith.select %112, %121, %119 : vector<1x3xi1>, vector<1x3xf32>
    %c0_36 = arith.constant 0 : index
    %c0_37 = arith.constant 0 : index
    %123 = vector.load %arg4[%c0_36, %c0_37] : memref<1x3xf32, #tpu.memory_space<vmem>>, vector<1x3xf32>
    tpu.vector_store %arg4[%c0_36, %c0_37], %122 {strides = array<i32>} : memref<1x3xf32, #tpu.memory_space<vmem>>, vector<1x3xf32>,
    return
  }
}

</mosaic_0001>

<bundles_post_ra>
// kernel: model_with_loss_forward.1
= control target key start
LH: loop header
LB: loop body
LE: loop exit
PB: predicated region body
PF: predicated region fallthrough
CT: control target
= control target key end

     0   :  { %10 = vsyncpa [#allocation3], 0  ;;  %s532_s15 = smov [#allocation2]   ;;  %s636_s0 = inlined_call_operand.hbm [shape: f32[16,32], index: 0, kind: input, shape index: {}]   ;;  %s637_s1 = inlined_call_operand.vmem [shape: f32[33,64], index: 1, kind: input, shape index: {}]   ;;  %s638_s2 = inlined_call_operand.vmem [shape: f32[16,4], index: 2, kind: input, shape index: {}]   ;;  %s639_s3 = inlined_call_operand.vmem [shape: f32[16,64], index: 3, kind: output, shape index: {0}]   ;;  %s640_s4 = inlined_call_operand.vmem [shape: f32[1,3], index: 4, kind: output, shape index: {1}]  }
   0x1   :  { %s16_s16 = sshll.u32 %s532_s15, 4  ;;  %s17_s16 = int_to_ptr.vmem [resolvable:$true] %s16_s16 }
   0x2   :  { %s518_s17 = scalar_lea.vmem %s17_s16, 256  ;;  %p523_p1 = scmp.lt.s32.totalorder %s17_s16, %s17_s16 }
   0x3   :  { %p519_p0 = scmp.ne.s32.totalorder %s17_s16, %s518_s17  ;;  %p524_p2 = scmp.lt.s32.totalorder %s518_s17, %s518_s17 }
   0x5   :  { %p525_p3 = por %p524_p2, %p523_p1 }
   0x7   :  { %p526_p4 = pnand %p525_p3, %p519_p0 }
   0x9   :  { %529 = shalt.err (!%p526_p4)
}
   0xa   :  { %s533_s18 = smov 128   ;;  %s534_s19 = smov 8  }
   0xb   :  { %22 = dma.hbm_to_vmem [thread:$0]  %s636_s0, 256, %s17_s16, [#allocation3], %s533_s18, %s533_s18, %s534_s19  }
   0xc   :  { %530 = dma.done.wait [#allocation3], 256  }
   0xd   :  { %531 = vsyncadd [#allocation3], 4294967040  ;;  %v535_v0 = vmov 3   ;;  %vm36_vm0 = vcmask 261120   ;;  %v35_v1 = vld [vmem:[%s637_s1 + $0x18] sm:$0xff]  ;;  %v34_v2 = vld [vmem:[%s637_s1 + $0x10] sm:$0xff]  ;;  %v214_v13 = vlaneseq }
   0xe   :  { %479 = vset.pattern.permute.xlu0 %v535_v0  ;;  %448 = vmatprep.subr.mxu0 %v35_v1  ;;  %v30_v3 = vld [vmem:[#allocation2] sm:$0xff]  ;;  %v33_v4 = vld [vmem:[%s637_s1 + $0x8] sm:$0xff]  ;;  %v536_v16 = vmov 0.0   ;;  %vm236_vm2 = vcmask 130048   ;;  %vm120_vm3 = vcmask 523264   ;;  %s537_s8 = smov 96  }
   0xf   :  { %449 = vmatpush3.msra.mxu0 %v35_v1  ;;  %456 = vmatprep.mubr.msk.f32.mxu0 %vm36_vm0, %v30_v3  ;;  %v582_v5 = vld [vmem:[%s638_s2] sm:$0xff]  ;;  %v587_v6 = vld [vmem:[%s638_s2 + $0x8] sm:$0xff]  ;;  %v595_v14 = vand.u32 127, %v214_v13  ;;  %v538_v43 = vmov 0   ;;  %v539_v44 = vmov 2   ;;  %vm368_vm5 = vcmask 23568  }
  0x10   :  { %450 = vmatprep.subr.mxu0 %v34_v2  ;;  %v466_v7 = vtrunc.f32 %v582_v5  ;;  %v468_v8 = vtrunc.f32 %v587_v6  ;;  %v32_v9 = vld [vmem:[%s637_s1] sm:$0xff]  ;;  %v31_v11 = vld [vmem:[#allocation2 + $0x8] sm:$0xff]  ;;  %481 = vset.pattern.permute.xlu1 %v539_v44  ;;  %v369_v46 = vsel %vm368_vm5, %v582_v5, 0.0  ;;  %vm201_vm10 = vcmask 7168  }
  0x11   :  { %451 = vmatpush3.msra.mxu0 %v34_v2  ;;  %v431_v22 = vld [vmem:[%s637_s1 + $0x20] ss:$0 sm:$0xff]  ;;  %v370_v48 = vrot.slane %v369_v46, 4  ;;  %vm168_vm11 = vcmask 15368   ;;  %vm400_vm12 = vcmp.eq.s32.totalorder %v595_v14, 1  ;;  %vm399_vm13 = vcmp.eq.s32.totalorder %v595_v14, 0 }
  0x12   :  { %452 = vmatprep.subr.mxu0 %v33_v4  ;;  %v467_v10 = vcvt.f32.s32 %v466_v7  ;;  %v469_v12 = vcvt.f32.s32 %v468_v8  ;;  %vm418_vm14 = vcmask 16384  }
  0x13   :  { %453 = vmatpush3.msra.mxu0 %v33_v4  ;;  %v371_v53 = vadd.f32 %v370_v48, %v369_v46 }
  0x14   :  { %454 = vmatprep.subr.mxu0 %v32_v9  ;;  %217 = vperm.xlu0 %479, %v467_v10  }
  0x15   :  { %455 = vmatpush3.msra.mxu0 %v32_v9  ;;  %v372_v56 = vrot.slane %v371_v53, 2 }
  0x16   :  { %457 = vmatmul.mubr.msk.f32.vlgmr.msra.gmra.mxu0 %vm36_vm0, %v31_v11 }
  0x17   :  { %v373_v61 = vadd.f32 %v372_v56, %v371_v53 }
  0x18   :  { %220 = vperm.xlu0 %479, %v469_v12  }
  0x19   :  { %v374_v8 = vrot.slane %v373_v61, 1 }
  0x1b   :  { %v375_v13 = vadd.f32 %v374_v8, %v373_v61 }
  0x1c   :  { %480 = vset.pattern.permute.xlu0 %v538_v43 }
  0x8f   :  { %v218_v15 = vpop.permute.xlu0 %217 }
  0x90   :  { %vm222_vm1 = vcmp.eq.s32.totalorder %v595_v14, %v218_v15 }
  0x91   :  { %v434_v17 = vsel %vm222_vm1, 1.0, %v536_v16 }
  0x92   :  { %463 = vmatprep.mubr.msk.f32.mxu1 %vm236_vm2, %v434_v17  ;;  %v376_v17 = vmul.f32 0.125, %v375_v13 }
  0x93   :  { %v221_v25 = vpop.permute.xlu0 %220 }
  0x94   :  { %vm223_vm4 = vcmp.eq.s32.totalorder %v595_v14, %v221_v25 }
  0x95   :  { %v435_v28 = vsel %vm223_vm4, 1.0, %v536_v16 }
  0xd6   :  { %v458_v18 = vpop.f32.mrf.mxu0 }
  0xd7   :  { %v119_v19 = vmax.f32 %v458_v18, 0.0 }
  0xd8   :  { %v109_v20 = vpop.f32.mrf.mxu0 }
  0xd9   :  { %122 = vst.msk [vmem:[%s639_s3 + $0x8] sm:$0xff] %vm120_vm3, %v119_v19  ;;  %v118_v21 = vmax.f32 %v109_v20, 0.0  ;;  %232 = vrot.lane.b32.xlu1 %v119_v19, %s537_s8  ;;  %v129_v24 = vmul.f32 %v431_v22, %v119_v19  ;;  %v620_v19 = vsub.f32 %v582_v5, %v376_v17 }
  0xdb   :  { %121 = vst.msk [vmem:[%s639_s3] sm:$0xff] %vm120_vm3, %v118_v21  ;;  %v128_v23 = vmul.f32 %v431_v22, %v118_v21  ;;  %v133_v36 = vsel %vm36_vm0, %v129_v24, 0.0 }
  0xdd   :  { %230 = vrot.lane.b32.xlu1 %v118_v21, %s537_s8  ;;  %138 = vrot.lane.b32.xlu0 %v128_v23, %s537_s8  ;;  %v130_v40 = vsel %vm36_vm0, %v128_v23, 0.0 }
  0xe1   :  { %140 = vrot.lane.b32.xlu1 %v129_v24, %s537_s8  ;;  %v378_v24 = vmul.f32 %v620_v19, %v620_v19 }
 0x14b   :  { %v233_v26 = vpop.permute.xlu1 %232 }
 0x14c   :  { %459 = vmatprep.subr.mxu1 %v233_v26 }
 0x14d   :  { %460 = vmatpush3.msra.mxu1 %v233_v26 }
 0x14f   :  { %v231_v27 = vpop.permute.xlu1 %230  ;;  %v139_v41 = vpop.permute.xlu0 %138 }
 0x150   :  { %461 = vmatprep.subr.mxu1 %v231_v27  ;;  %v144_v42 = vsel %vm36_vm0, %v139_v41, 0.0 }
 0x151   :  { %462 = vmatpush3.msra.mxu1 %v231_v27  ;;  %v379_v27 = vsel %vm368_vm5, %v378_v24, 0.0 }
 0x152   :  { %464 = vmatmul.mubr.msk.f32.vlgmr.msra.gmra.mxu1 %vm236_vm2, %v435_v28 }
 0x153   :  { %v141_v37 = vpop.permute.xlu1 %140 }
 0x154   :  { %v147_v39 = vsel %vm36_vm0, %v141_v37, 0.0 }
 0x212   :  { %v465_v29 = vpop.f32.mrf.mxu1 }
 0x213   :  { %v334_v30 = vmul.f32 %v465_v29, %v465_v29 }
 0x214   :  { %v309_v31 = vpop.f32.mrf.mxu1 }
 0x215   :  { %v322_v32 = vmul.f32 %v309_v31, %v309_v31  ;;  %v335_v33 = vsel %vm36_vm0, %v334_v30, 0.0  ;;  %v318_v34 = vmul.f32 %v465_v29, %v309_v31 }
 0x216   :  { %336 = vadd.xlane.f32.xlu1 %v335_v33  ;;  %v380_v33 = vrot.slane %v379_v27, 4 }
 0x217   :  { %v323_v35 = vsel %vm36_vm0, %v322_v32, 0.0  ;;  %v319_v38 = vsel %vm36_vm0, %v318_v34, 0.0 }
 0x218   :  { %324 = vadd.xlane.f32.xlu0 %v323_v35  ;;  %v381_v41 = vadd.f32 %v380_v33, %v379_v27 }
 0x21a   :  { %134 = vadd.xlane.f32.xlu1 %v133_v36 }
 0x21c   :  { %320 = vadd.xlane.f32.xlu0 %v319_v38 }
 0x21e   :  { %148 = vadd.xlane.f32.xlu1 %v147_v39 }
 0x220   :  { %131 = vadd.xlane.f32.xlu0 %v130_v40 }
 0x224   :  { %145 = vadd.xlane.f32.xlu0 %v144_v42 }
 0x29f   :  { %v337_v45 = vpop.xlane.xlu1 %336 }
 0x2a0   :  { %484 = vrsqrt.f32 %v337_v45  ;;  %vm340_vm6 = vcmp.eq.f32.partialorder %v337_v45, inf  ;;  %v343_v0 = vand.u32 2147483648, %v337_v45  ;;  %vm342_vm7 = vcmp.eq.f32.partialorder %v337_v45, 0.0 }
 0x2a1   :  { %v325_v47 = vpop.xlane.xlu0 %324 }
 0x2a2   :  { %486 = vrsqrt.f32 %v325_v47  ;;  %vm328_vm8 = vcmp.eq.f32.partialorder %v325_v47, inf  ;;  %v331_v4 = vand.u32 2147483648, %v325_v47  ;;  %vm330_vm9 = vcmp.eq.f32.partialorder %v325_v47, 0.0 }
 0x2a3   :  { %v135_v49 = vpop.xlane.xlu1 %134 }
 0x2a4   :  { %v186_v50 = vand.u32 2147483647, %v135_v49  ;;  %v180_v30 = vmax.f32 %v135_v49, 0.0  ;;  %v182_v31 = vmul.f32 %v587_v6, %v135_v49 }
 0x2a5   :  { %v321_v51 = vpop.xlane.xlu0 %320 }
 0x2a6   :  { %v188_v52 = vsub.f32 0.0, %v186_v50  ;;  %v184_v38 = vsub.f32 %v180_v30, %v182_v31  ;;  %v382_v50 = vrot.slane %v381_v41, 2 }
 0x2a7   :  { %v149_v22 = vpop.xlane.xlu1 %148 }
 0x2a8   :  { %v191_v54 = vmul.f32 1.442695, %v188_v52  ;;  %v433_v25 = vmul.f32 -1.442695, %v149_v22 }
 0x2a9   :  { %v132_v55 = vpop.xlane.xlu0 %131 }
 0x2aa   :  { %488 = vpow2.f32 %v191_v54  ;;  %v185_v57 = vand.u32 2147483647, %v132_v55  ;;  %v179_v36 = vmax.f32 %v132_v55, 0.0  ;;  %v181_v37 = vmul.f32 %v582_v5, %v132_v55 }
 0x2ac   :  { %v187_v58 = vsub.f32 0.0, %v185_v57  ;;  %v183_v44 = vsub.f32 %v179_v36, %v181_v37 }
 0x2ad   :  { %v485_v59 = vpop.eup %484  ;;  %v146_v21 = vpop.xlane.xlu0 %145 }
 0x2ae   :  { %v339_v60 = vmul.f32 %v485_v59, %v337_v45  ;;  %v189_v62 = vmul.f32 1.442695, %v187_v58  ;;  %v432_v23 = vmul.f32 -1.442695, %v146_v21  ;;  %v383_v58 = vadd.f32 %v382_v50, %v381_v41 }
 0x2af   :  { %v487_v63 = vpop.eup %486 }
 0x2b0   :  { %v341_v1 = vsel %vm340_vm6, %v337_v45, %v339_v60  ;;  %v327_v2 = vmul.f32 %v487_v63, %v325_v47  ;;  %490 = vpow2.f32 %v189_v62 }
 0x2b1   :  { %v344_v3 = vsel %vm342_vm7, %v343_v0, %v341_v1  ;;  %v384_v0 = vrot.slane %v383_v58, 1 }
 0x2b2   :  { %v329_v7 = vsel %vm328_vm8, %v325_v47, %v327_v2  ;;  %v345_v10 = vmax.f32 %v344_v3, 1e-08 }
 0x2b3   :  { %v332_v9 = vsel %vm330_vm9, %v331_v4, %v329_v7  ;;  %v385_v7 = vadd.f32 %v384_v0, %v383_v58 }
 0x2b4   :  { %v333_v11 = vmax.f32 %v332_v9, 1e-08 }
 0x2b6   :  { %v346_v12 = vmul.f32 %v345_v10, %v333_v11 }
 0x2b7   :  { %v489_v15 = vpop.eup %488 }
 0x2b8   :  { %v194_v16 = vadd.f32 1.0, %v489_v15  ;;  %492 = vrcp.f32 %v346_v12  ;;  %v386_v12 = vmul.f32 0.14285715, %v385_v7 }
 0x2ba   :  { %494 = vlog2.f32 %v194_v16 }
 0x2bd   :  { %v491_v18 = vpop.eup %490 }
 0x2be   :  { %v193_v20 = vadd.f32 1.0, %v491_v18  ;;  %v540_v18 = vmov 1  }
 0x2c0   :  { %496 = vlog2.f32 %v193_v20 }
 0x2c1   :  { %498 = vpow2.f32 %v432_v23 }
 0x2c2   :  { %500 = vpow2.f32 %v433_v25 }
 0x2c5   :  { %v493_v26 = vpop.eup %492 }
 0x2c6   :  { %v348_v28 = vmul.f32 %v493_v26, %v321_v51 }
 0x2c7   :  { %v495_v29 = vpop.eup %494 }
 0x2c8   :  { %v349_v32 = vsub.f32 1.0, %v348_v28  ;;  %v198_v34 = vmul.f32 0.6931472, %v495_v29 }
 0x2ca   :  { %v350_v35 = vrot.slane %v349_v32, 4  ;;  %v200_v42 = vadd.f32 %v198_v34, %v184_v38 }
 0x2cc   :  { %v351_v39 = vadd.f32 %v350_v35, %v349_v32  ;;  %v203_v49 = vsel %vm201_vm10, %v200_v42, 0.0 }
 0x2cd   :  { %v497_v40 = vpop.eup %496 }
 0x2ce   :  { %v352_v43 = vrot.slane %v351_v39, 2  ;;  %v196_v45 = vmul.f32 0.6931472, %v497_v40  ;;  %v499_v48 = vpop.eup %498 }
 0x2cf   :  { %v501_v54 = vpop.eup %500  ;;  %v156_v55 = vadd.f32 1.0, %v499_v48 }
 0x2d0   :  { %v353_v46 = vadd.f32 %v352_v43, %v351_v39  ;;  %v199_v47 = vadd.f32 %v196_v45, %v183_v44  ;;  %v157_v60 = vadd.f32 1.0, %v501_v54 }
 0x2d1   :  { %502 = vrcp.f32 %v156_v55 }
 0x2d2   :  { %v354_v51 = vrot.slane %v353_v46, 1  ;;  %v202_v52 = vsel %vm201_vm10, %v199_v47, 0.0  ;;  %504 = vrcp.f32 %v157_v60 }
 0x2d3   :  { %v204_v53 = vadd.f32 %v203_v49, %v202_v52  ;;  %506 = vrsqrt.f32 %v386_v12 }
 0x2d4   :  { %v355_v56 = vadd.f32 %v354_v51, %v353_v46 }
 0x2d5   :  { %v205_v57 = vrot.slane %v204_v53, 4 }
 0x2d6   :  { %v356_v59 = vmul.f32 0.125, %v355_v56 }
 0x2d7   :  { %v206_v61 = vadd.f32 %v205_v57, %v204_v53 }
 0x2d8   :  { %v357_v62 = vsub.f32 %v349_v32, %v356_v59 }
 0x2d9   :  { %v207_v63 = vrot.slane %v206_v61, 2 }
 0x2da   :  { %v358_v1 = vmul.f32 %v357_v62, %v357_v62 }
 0x2db   :  { %v208_v2 = vadd.f32 %v207_v63, %v206_v61 }
 0x2dc   :  { %v359_v3 = vrot.slane %v358_v1, 4 }
 0x2dd   :  { %v209_v4 = vrot.slane %v208_v2, 1 }
 0x2de   :  { %v360_v8 = vadd.f32 %v359_v3, %v358_v1  ;;  %v503_v16 = vpop.eup %502 }
 0x2df   :  { %v210_v9 = vadd.f32 %v209_v4, %v208_v2  ;;  %v505_v20 = vpop.eup %504  ;;  %v164_v22 = vsub.f32 %v503_v16, %v582_v5 }
 0x2e0   :  { %v361_v10 = vrot.slane %v360_v8, 2  ;;  %v165_v23 = vsub.f32 %v505_v20, %v587_v6  ;;  %v507_v27 = vpop.eup %506 }
 0x2e1   :  { %v211_v11 = vmul.f32 0.0625, %v210_v9  ;;  %v166_v24 = vand.u32 2147483647, %v164_v22  ;;  %v388_v30 = vmul.f32 %v507_v27, %v620_v19 }
 0x2e2   :  { %v362_v13 = vadd.f32 %v361_v10, %v360_v8  ;;  %v167_v25 = vand.u32 2147483647, %v165_v23 }
 0x2e3   :  { %403 = vperm.xlu0 %480, %v211_v11   ;;  %v169_v26 = vsel %vm168_vm11, %v166_v24, 0.0 }
 0x2e4   :  { %v363_v15 = vrot.slane %v362_v13, 1  ;;  %v170_v28 = vsel %vm168_vm11, %v167_v25, 0.0 }
 0x2e5   :  { %v171_v29 = vadd.f32 %v170_v28, %v169_v26 }
 0x2e6   :  { %v364_v17 = vadd.f32 %v363_v15, %v362_v13 }
 0x2e7   :  { %483 = vset.pattern.permute.xlu0 %v540_v18  ;;  %v172_v33 = vrot.slane %v171_v29, 4 }
 0x2e8   :  { %v365_v21 = vmul.f32 0.14285715, %v364_v17 }
 0x2e9   :  { %v173_v36 = vadd.f32 %v172_v33, %v171_v29 }
 0x2ea   :  { %508 = vrsqrt.f32 %v365_v21 }
 0x2eb   :  { %v174_v38 = vrot.slane %v173_v36, 2 }
 0x2ed   :  { %v175_v40 = vadd.f32 %v174_v38, %v173_v36 }
 0x2ef   :  { %v176_v43 = vrot.slane %v175_v40, 1 }
 0x2f1   :  { %v177_v46 = vadd.f32 %v176_v43, %v175_v40 }
 0x2f3   :  { %v178_v19 = vmul.f32 0.0625, %v177_v46 }
 0x2f7   :  { %v509_v31 = vpop.eup %508 }
 0x2f8   :  { %v367_v32 = vmul.f32 %v509_v31, %v357_v62 }
 0x2fa   :  { %v389_v34 = vsub.f32 %v367_v32, %v388_v30 }
 0x2fc   :  { %v390_v35 = vand.u32 2147483647, %v389_v34 }
 0x2fe   :  { %v391_v5 = vsel %vm368_vm5, %v390_v35, 0.0 }
 0x2ff   :  { %v392_v37 = vrot.slane %v391_v5, 4 }
 0x301   :  { %v393_v6 = vadd.f32 %v392_v37, %v391_v5 }
 0x303   :  { %v394_v39 = vrot.slane %v393_v6, 2 }
 0x305   :  { %v395_v41 = vadd.f32 %v394_v39, %v393_v6 }
 0x307   :  { %v396_v42 = vrot.slane %v395_v41, 1 }
 0x309   :  { %v397_v44 = vadd.f32 %v396_v42, %v395_v41 }
 0x30b   :  { %v398_v45 = vmul.f32 0.125, %v397_v44 }
 0x30d   :  { %408 = vperm.xlu1 %481, %v398_v45  }
 0x311   :  { %482 = vset.pattern.permute.xlu1 %v540_v18 }
 0x312   :  { %414 = vperm.xlu1 %482, %v178_v19  }
 0x35e   :  { %v404_v48 = vpop.permute.xlu0 %403 }
 0x388   :  { %v409_v47 = vpop.permute.xlu1 %408 }
 0x389   :  { %v411_v49 = vsel %vm400_vm12, %v404_v48, %v409_v47 }
 0x38d   :  { %v415_v50 = vpop.permute.xlu1 %414 }
 0x38e   :  { %v417_v51 = vsel %vm399_vm13, %v415_v50, %v411_v49 }
 0x38f   :  { %419 = vst.msk [vmem:[%s640_s4] sm:$0x1] %vm418_vm14, %v417_v51 }
 0x390   :  { %428 = vsyncpa [#allocation3], 1 }

</bundles_post_ra>
